<compile_context>
chip_gen: v6e
topology: v6e:2x2x1
jax: 0.10.0
libtpu: 0.0.40
codegen_flags: <defaults>
</compile_context>

<pallas_src>
import functools
import math

import jax
import jax.numpy as jnp
from jax.experimental import pallas as pl
from jax.experimental.pallas import tpu as pltpu


def _round_up(x, m):
    return ((x + m - 1) // m) * m


def _mlp_sigmoid_kernel(num_layers, matmul_dtype, *refs):
    """Fused MLP + sigmoid on one batch tile.

    refs = (y, W0, b0, ..., W_{L-1}, b_{L-1}, W_out, b_out, out).
    Weights arrive pre-cast to `matmul_dtype`; biases are f32.  Matmuls
    accumulate in f32; bias add, ReLU and sigmoid run in f32.  The output tile
    may be lane-folded: o_ref has shape (block_b // fold, fold * dim_out) with
    batch rows packed in row-major order (plain reshape restores them).
    """
    y_ref = refs[0]
    o_ref = refs[-1]
    p = refs[1:-1]

    h = y_ref[...]                       # no standalone f32 copy of the tile
    for layer in range(num_layers):
        w = p[2 * layer][...]            # already matmul_dtype
        b = p[2 * layer + 1][...]        # f32
        z = jnp.dot(h.astype(matmul_dtype), w, preferred_element_type=jnp.float32)
        h = jnp.maximum(z + b, 0.0)
    w_out = p[2 * num_layers][...]
    b_out = p[2 * num_layers + 1][...]
    z = jnp.dot(h.astype(matmul_dtype), w_out,
                preferred_element_type=jnp.float32) + b_out
    # Lane-dense store: pack `fold` batch rows per 128-lane output row.
    o_ref[...] = jax.nn.sigmoid(z).astype(o_ref.dtype).reshape(o_ref.shape)


def ber_encoder(Y, params, *, block_b=1024, matmul_dtype=jnp.bfloat16):
    """BerEncoder forward: sigmoid(MLP(Y)).

    params: list of (W[in,out], b[1,out]) pairs; last pair is the output layer.
    Y may be float32 or bfloat16 (pass bf16 straight from the producer; do not
    add a standalone cast).  matmul_dtype=jnp.float32 reproduces the PyTorch
    reference exactly; the bf16 default is the MXU fast path with f32
    accumulation (~1e-2 abs deviation).
    """
    B, dim_in = Y.shape
    widths = [int(W.shape[1]) for W, _ in params]
    dim_out = widths[-1]
    num_layers = len(params) - 1

    matmul_dtype = jnp.dtype(matmul_dtype)
    mm_itemsize = matmul_dtype.itemsize
    out_dtype = Y.dtype
    out_itemsize = jnp.dtype(out_dtype).itemsize

    # Pre-cast weights once (halves weight DMA + VMEM residency, removes the
    # per-grid-step VPU converts); biases stay f32 so bias/ReLU math is exact.
    cast_params = [
        (W if W.dtype == matmul_dtype else W.astype(matmul_dtype),
         b if b.dtype == jnp.float32 else b.astype(jnp.float32))
        for W, b in params
    ]
    flat_params = [t for pair in cast_params for t in pair]
    param_bytes = sum(W.size * mm_itemsize + b.size * 4 for W, b in cast_params)

    # ---- generation-aware VMEM / core model --------------------------------
    try:
        vmem_capacity = int(pltpu.get_tpu_info().vmem_capacity_bytes)
    except Exception:                     # noqa: BLE001 - conservative fallback
        vmem_capacity = 64 << 20          # v7x per-TC size
    two_tc = vmem_capacity <= (96 << 20)  # v7x: 64 MiB/TC + 2 TCs; v5e/v6e: 128 MiB, 1 TC
    vmem_budget = (3 * vmem_capacity) // 4

    # ---- lane-dense output fold ---------------------------------------------
    fold = 1
    if 0 < dim_out < 128 and 128 % dim_out == 0 and B % (128 // dim_out) == 0:
        fold = 128 // dim_out

    # ---- batch-tile sizing ---------------------------------------------------
    align = max(8, 32 // mm_itemsize)        # 8 for f32, 16 for bf16, 32 for 8-bit
    tile_align = math.lcm(align, 8 * fold)   # folded tile keeps /8 sublanes too
    block_b = int(block_b)
    if block_b >= B:
        if two_tc and B >= 2 * tile_align:
            # >=2 grid steps so "parallel" can shard the batch over both v7x TCs.
            block_b = min(B, _round_up(pl.cdiv(B, 2), tile_align))
        else:
            block_b = B                       # single-TC: one full-extent block
    else:
        block_b = min(B, max(tile_align, (block_b // tile_align) * tile_align))

    # Per-row VMEM: activations live two layers at a time (f32 + matmul-dtype
    # operand copy), plus double-buffered input/output tiles.
    chain = [dim_in] + widths
    max_pair = max(chain[i] + chain[i + 1] for i in range(len(chain) - 1))
    bytes_per_row = ((4 + mm_itemsize) * max_pair
                     + 2 * dim_in * Y.dtype.itemsize
                     + 2 * dim_out * out_itemsize)
    while (block_b > tile_align
           and block_b * bytes_per_row + param_bytes > vmem_budget):
        block_b = max(tile_align, ((block_b // 2) // tile_align) * tile_align)

    vmem_limit = int(min(
        max(block_b * bytes_per_row + 2 * param_bytes + (4 << 20), 16 << 20),
        (9 * vmem_capacity) // 10))

    # ---- cost estimate (scheduling hint) ------------------------------------
    layer_ins = [dim_in] + widths[:-1]
    flops = int(sum(2 * B * fi * fo for fi, fo in zip(layer_ins, widths)))
    cost = pl.CostEstimate(
        flops=flops,
        transcendentals=B * dim_out,
        bytes_accessed=int(Y.size * Y.dtype.itemsize
                           + B * dim_out * out_itemsize
                           + param_bytes))

    kernel = functools.partial(_mlp_sigmoid_kernel, num_layers, matmul_dtype)

    def run(fold_k, weight_mode):
        spec_kw = {} if weight_mode is None else {"pipeline_mode": weight_mode}
        in_specs = [pl.BlockSpec((block_b, dim_in), lambda i: (i, 0))]
        for W, b in cast_params:
            # Full-tensor blocks with a constant index_map: content is not
            # re-fetched from HBM every grid step.
            in_specs.append(pl.BlockSpec(W.shape, lambda i: (0, 0), **spec_kw))
            in_specs.append(pl.BlockSpec(b.shape, lambda i: (0, 0), **spec_kw))
        out_spec = pl.BlockSpec((block_b // fold_k, fold_k * dim_out),
                                lambda i: (i, 0))
        return pl.pallas_call(
            kernel,
            out_shape=jax.ShapeDtypeStruct((B // fold_k, fold_k * dim_out),
                                           out_dtype),
            grid_spec=pltpu.PrefetchScalarGridSpec(
                num_scalar_prefetch=0,
                grid=(pl.cdiv(B, block_b),),
                in_specs=in_specs,
                out_specs=out_spec),
            compiler_params=pltpu.CompilerParams(
                dimension_semantics=("parallel",),
                vmem_limit_bytes=vmem_limit),
            cost_estimate=cost,
        )(Y, *flat_params)

    # Preferred config first; degrade gracefully (drop single-buffered weights,
    # then the lane fold) if the Mosaic version rejects pipeline_mode / reshape.
    try:
        single_buf = pl.Buffered(1)
    except Exception:                     # noqa: BLE001
        single_buf = None
    attempts = [(fold, single_buf), (fold, None)]
    if fold != 1:
        attempts += [(1, single_buf), (1, None)]
    last_err = None
    for fold_k, weight_mode in attempts:
        try:
            out_folded = run(fold_k, weight_mode)
            break
        except Exception as e:            # noqa: BLE001 - fall back to safer config
            last_err = e
    else:
        raise last_err

    return out_folded.reshape(B, dim_out)


def init_params(key, dim_input, dim_hidden, dim_output, num_layers):
    """Deterministic PyTorch-Linear-style init: U(-1/sqrt(fan_in), 1/sqrt(fan_in))."""
    params = []
    dims = [dim_input] + [dim_hidden] * num_layers + [dim_output]
    for layer in range(num_layers + 1):
        fan_in, fan_out = dims[layer], dims[layer + 1]
        key, kw, kb = jax.random.split(key, 3)
        bound = 1.0 / jnp.sqrt(fan_in)
        W = jax.random.uniform(kw, (fan_in, fan_out), jnp.float32, -bound, bound)
        b = jax.random.uniform(kb, (1, fan_out), jnp.float32, -bound, bound)
        params.append((W, b))
    return params


def ber_encoder_ref(Y, params):
    h = Y
    for W, b in params[:-1]:
        h = jnp.maximum(h @ W + b, 0.0)
    W_out, b_out = params[-1]
    return jax.nn.sigmoid(h @ W_out + b_out)


if __name__ == "__main__":
    B, dim_input, dim_hidden, dim_output, num_layers = 64, 32, 64, 16, 2

    key = jax.random.PRNGKey(0)
    key, ky = jax.random.split(key)
    Y = jax.random.normal(ky, (B, dim_input), jnp.float32)
    params = init_params(key, dim_input, dim_hidden, dim_output, num_layers)

    ref = ber_encoder_ref(Y, params)

    # Exact-math path (f32 matmuls) — tight tolerance.
    out_f32 = jax.block_until_ready(
        ber_encoder(Y, params, matmul_dtype=jnp.float32))
    assert out_f32.shape == (B, dim_output)
    assert jnp.allclose(out_f32, ref, atol=1e-5, rtol=1e-5)

    # Default fast path (bf16 matmul operands, f32 accumulate) — loose tolerance.
    out = jax.block_until_ready(ber_encoder(Y, params))
    assert out.shape == (B, dim_output)
    assert jnp.allclose(out, ref, atol=2e-2, rtol=2e-2)

    # bf16 activations end-to-end (caller already has bf16; no wrapper cast).
    out_bf16 = jax.block_until_ready(ber_encoder(Y.astype(jnp.bfloat16), params))
    assert out_bf16.shape == (B, dim_output)
    assert jnp.allclose(out_bf16.astype(jnp.float32), ref, atol=6e-2, rtol=6e-2)

    print("KERNEL_OK")
</pallas_src>

<mosaic_0001>
module attributes {stable_mosaic.version = 11 : i64} {
  func.func @_mlp_sigmoid_kernel(%arg0: i32, %arg1: memref<64x32xf32, #tpu.memory_space<vmem>>, %arg2: memref<32x64xf32, #tpu.memory_space<vmem>>, %arg3: memref<1x64xf32, #tpu.memory_space<vmem>>, %arg4: memref<64x64xf32, #tpu.memory_space<vmem>>, %arg5: memref<1x64xf32, #tpu.memory_space<vmem>>, %arg6: memref<64x16xf32, #tpu.memory_space<vmem>>, %arg7: memref<1x16xf32, #tpu.memory_space<vmem>>, %arg8: memref<8x128xf32, #tpu.memory_space<vmem>>) attributes {dimension_semantics = [#tpu.dimension_semantics<parallel>], iteration_bounds = array<i64: 1>, scalar_prefetch = 0 : i64, scratch_operands = 0 : i64, tpu.core_type = #tpu.core_type<tc>, window_params = [{transform_indices = @transform_0, window_bounds = array<i64: 64, 32>}, {pipeline_mode = #tpu.pipeline_mode<synchronous>, transform_indices = @transform_1, window_bounds = array<i64: 32, 64>}, {pipeline_mode = #tpu.pipeline_mode<synchronous>, transform_indices = @transform_2, window_bounds = array<i64: 1, 64>}, {pipeline_mode = #tpu.pipeline_mode<synchronous>, transform_indices = @transform_3, window_bounds = array<i64: 64, 64>}, {pipeline_mode = #tpu.pipeline_mode<synchronous>, transform_indices = @transform_4, window_bounds = array<i64: 1, 64>}, {pipeline_mode = #tpu.pipeline_mode<synchronous>, transform_indices = @transform_5, window_bounds = array<i64: 64, 16>}, {pipeline_mode = #tpu.pipeline_mode<synchronous>, transform_indices = @transform_6, window_bounds = array<i64: 1, 16>}, {transform_indices = @transform_7, window_bounds = array<i64: 8, 128>}]} {
    %c0 = arith.constant 0 : index
    %c0_0 = arith.constant 0 : index
    %0 = vector.load %arg1[%c0, %c0_0] : memref<64x32xf32, #tpu.memory_space<vmem>>, vector<64x32xf32>
    %c0_1 = arith.constant 0 : index
    %c0_2 = arith.constant 0 : index
    %1 = vector.load %arg2[%c0_1, %c0_2] : memref<32x64xf32, #tpu.memory_space<vmem>>, vector<32x64xf32>
    %c0_3 = arith.constant 0 : index
    %c0_4 = arith.constant 0 : index
    %2 = vector.load %arg3[%c0_3, %c0_4] : memref<1x64xf32, #tpu.memory_space<vmem>>, vector<1x64xf32>
    %cst = arith.constant dense<0.000000e+00> : vector<64x64xf32>
    %3 = tpu.matmul %0, %1, %cst {dimension_numbers = #tpu.dot_dimension_numbers<[1], [0], [0], [1], [0, 0, 1, 1], [], []>} : vector<64x32xf32>, vector<32x64xf32>, vector<64x64xf32> -> vector<64x64xf32>
    %4 = vector.broadcast %2 : vector<1x64xf32> to vector<64x64xf32>
    %5 = arith.addf %3, %4 : vector<64x64xf32>
    %cst_5 = arith.constant 0.000000e+00 : f32
    %6 = vector.broadcast %cst_5 : f32 to vector<64x64xf32>
    %7 = arith.maximumf %5, %6 : vector<64x64xf32>
    %c0_6 = arith.constant 0 : index
    %c0_7 = arith.constant 0 : index
    %8 = vector.load %arg4[%c0_6, %c0_7] : memref<64x64xf32, #tpu.memory_space<vmem>>, vector<64x64xf32>
    %c0_8 = arith.constant 0 : index
    %c0_9 = arith.constant 0 : index
    %9 = vector.load %arg5[%c0_8, %c0_9] : memref<1x64xf32, #tpu.memory_space<vmem>>, vector<1x64xf32>
    %cst_10 = arith.constant dense<0.000000e+00> : vector<64x64xf32>
    %10 = tpu.matmul %7, %8, %cst_10 {dimension_numbers = #tpu.dot_dimension_numbers<[1], [0], [0], [1], [0, 0, 1, 1], [], []>} : vector<64x64xf32>, vector<64x64xf32>, vector<64x64xf32> -> vector<64x64xf32>
    %11 = vector.broadcast %9 : vector<1x64xf32> to vector<64x64xf32>
    %12 = arith.addf %10, %11 : vector<64x64xf32>
    %cst_11 = arith.constant 0.000000e+00 : f32
    %13 = vector.broadcast %cst_11 : f32 to vector<64x64xf32>
    %14 = arith.maximumf %12, %13 : vector<64x64xf32>
    %c0_12 = arith.constant 0 : index
    %c0_13 = arith.constant 0 : index
    %15 = vector.load %arg6[%c0_12, %c0_13] : memref<64x16xf32, #tpu.memory_space<vmem>>, vector<64x16xf32>
    %c0_14 = arith.constant 0 : index
    %c0_15 = arith.constant 0 : index
    %16 = vector.load %arg7[%c0_14, %c0_15] : memref<1x16xf32, #tpu.memory_space<vmem>>, vector<1x16xf32>
    %cst_16 = arith.constant dense<0.000000e+00> : vector<64x16xf32>
    %17 = tpu.matmul %14, %15, %cst_16 {dimension_numbers = #tpu.dot_dimension_numbers<[1], [0], [0], [1], [0, 0, 1, 1], [], []>} : vector<64x64xf32>, vector<64x16xf32>, vector<64x16xf32> -> vector<64x16xf32>
    %18 = vector.broadcast %16 : vector<1x16xf32> to vector<64x16xf32>
    %19 = arith.addf %17, %18 : vector<64x16xf32>
    %20 = arith.negf %19 : vector<64x16xf32>
    %21 = math.exp %20 : vector<64x16xf32>
    %cst_17 = arith.constant 1.000000e+00 : f32
    %22 = vector.broadcast %cst_17 : f32 to vector<64x16xf32>
    %23 = arith.addf %22, %21 : vector<64x16xf32>
    %24 = arith.divf %22, %23 : vector<64x16xf32>
    %25 = vector.shape_cast %24 : vector<64x16xf32> to vector<8x128xf32>
    %c0_18 = arith.constant 0 : index
    %c0_19 = arith.constant 0 : index
    %26 = vector.load %arg8[%c0_18, %c0_19] : memref<8x128xf32, #tpu.memory_space<vmem>>, vector<8x128xf32>
    tpu.vector_store %arg8[%c0_18, %c0_19], %25 {strides = array<i32>} : memref<8x128xf32, #tpu.memory_space<vmem>>, vector<8x128xf32>,
    return
  }
  func.func @transform_0(%arg0: i32) -> (i32, i32) {
    %c0_i32 = arith.constant 0 : i32
    %c0_i32_0 = arith.constant 0 : i32
    return %arg0, %c0_i32 : i32, i32
  }
  func.func @transform_1(%arg0: i32) -> (i32, i32) {
    %c0_i32 = arith.constant 0 : i32
    %c0_i32_0 = arith.constant 0 : i32
    %c0_i32_1 = arith.constant 0 : i32
    return %c0_i32, %c0_i32_0 : i32, i32
  }
  func.func @transform_2(%arg0: i32) -> (i32, i32) {
    %c0_i32 = arith.constant 0 : i32
    %c0_i32_0 = arith.constant 0 : i32
    %c0_i32_1 = arith.constant 0 : i32
    return %c0_i32, %c0_i32_0 : i32, i32
  }
  func.func @transform_3(%arg0: i32) -> (i32, i32) {
    %c0_i32 = arith.constant 0 : i32
    %c0_i32_0 = arith.constant 0 : i32
    %c0_i32_1 = arith.constant 0 : i32
    return %c0_i32, %c0_i32_0 : i32, i32
  }
  func.func @transform_4(%arg0: i32) -> (i32, i32) {
    %c0_i32 = arith.constant 0 : i32
    %c0_i32_0 = arith.constant 0 : i32
    %c0_i32_1 = arith.constant 0 : i32
    return %c0_i32, %c0_i32_0 : i32, i32
  }
  func.func @transform_5(%arg0: i32) -> (i32, i32) {
    %c0_i32 = arith.constant 0 : i32
    %c0_i32_0 = arith.constant 0 : i32
    %c0_i32_1 = arith.constant 0 : i32
    return %c0_i32, %c0_i32_0 : i32, i32
  }
  func.func @transform_6(%arg0: i32) -> (i32, i32) {
    %c0_i32 = arith.constant 0 : i32
    %c0_i32_0 = arith.constant 0 : i32
    %c0_i32_1 = arith.constant 0 : i32
    return %c0_i32, %c0_i32_0 : i32, i32
  }
  func.func @transform_7(%arg0: i32) -> (i32, i32) {
    %c0_i32 = arith.constant 0 : i32
    %c0_i32_0 = arith.constant 0 : i32
    return %arg0, %c0_i32 : i32, i32
  }
}

module attributes {stable_mosaic.version = 11 : i64} {
  func.func @_mlp_sigmoid_kernel(%arg0: i32, %arg1: memref<64x32xf32, #tpu.memory_space<vmem>>, %arg2: memref<32x64xf32, #tpu.memory_space<vmem>>, %arg3: memref<1x64xf32, #tpu.memory_space<vmem>>, %arg4: memref<64x64xf32, #tpu.memory_space<vmem>>, %arg5: memref<1x64xf32, #tpu.memory_space<vmem>>, %arg6: memref<64x16xf32, #tpu.memory_space<vmem>>, %arg7: memref<1x16xf32, #tpu.memory_space<vmem>>, %arg8: memref<8x128xf32, #tpu.memory_space<vmem>>) attributes {dimension_semantics = [#tpu.dimension_semantics<parallel>], iteration_bounds = array<i64: 1>, scalar_prefetch = 0 : i64, scratch_operands = 0 : i64, tpu.core_type = #tpu.core_type<tc>, window_params = [{transform_indices = @transform_0, window_bounds = array<i64: 64, 32>}, {pipeline_mode = #tpu.pipeline_mode<synchronous>, transform_indices = @transform_1, window_bounds = array<i64: 32, 64>}, {pipeline_mode = #tpu.pipeline_mode<synchronous>, transform_indices = @transform_2, window_bounds = array<i64: 1, 64>}, {pipeline_mode = #tpu.pipeline_mode<synchronous>, transform_indices = @transform_3, window_bounds = array<i64: 64, 64>}, {pipeline_mode = #tpu.pipeline_mode<synchronous>, transform_indices = @transform_4, window_bounds = array<i64: 1, 64>}, {pipeline_mode = #tpu.pipeline_mode<synchronous>, transform_indices = @transform_5, window_bounds = array<i64: 64, 16>}, {pipeline_mode = #tpu.pipeline_mode<synchronous>, transform_indices = @transform_6, window_bounds = array<i64: 1, 16>}, {transform_indices = @transform_7, window_bounds = array<i64: 8, 128>}]} {
    %c0 = arith.constant 0 : index
    %c0_0 = arith.constant 0 : index
    %0 = vector.load %arg1[%c0, %c0_0] : memref<64x32xf32, #tpu.memory_space<vmem>>, vector<64x32xf32>
    %c0_1 = arith.constant 0 : index
    %c0_2 = arith.constant 0 : index
    %1 = vector.load %arg2[%c0_1, %c0_2] : memref<32x64xf32, #tpu.memory_space<vmem>>, vector<32x64xf32>
    %c0_3 = arith.constant 0 : index
    %c0_4 = arith.constant 0 : index
    %2 = vector.load %arg3[%c0_3, %c0_4] : memref<1x64xf32, #tpu.memory_space<vmem>>, vector<1x64xf32>
    %cst = arith.constant dense<0.000000e+00> : vector<64x64xf32>
    %3 = tpu.matmul %0, %1, %cst {dimension_numbers = #tpu.dot_dimension_numbers<[1], [0], [0], [1], [0, 0, 1, 1], [], []>} : vector<64x32xf32>, vector<32x64xf32>, vector<64x64xf32> -> vector<64x64xf32>
    %4 = vector.broadcast %2 : vector<1x64xf32> to vector<64x64xf32>
    %5 = arith.addf %3, %4 : vector<64x64xf32>
    %cst_5 = arith.constant 0.000000e+00 : f32
    %6 = vector.broadcast %cst_5 : f32 to vector<64x64xf32>
    %7 = arith.maximumf %5, %6 : vector<64x64xf32>
    %c0_6 = arith.constant 0 : index
    %c0_7 = arith.constant 0 : index
    %8 = vector.load %arg4[%c0_6, %c0_7] : memref<64x64xf32, #tpu.memory_space<vmem>>, vector<64x64xf32>
    %c0_8 = arith.constant 0 : index
    %c0_9 = arith.constant 0 : index
    %9 = vector.load %arg5[%c0_8, %c0_9] : memref<1x64xf32, #tpu.memory_space<vmem>>, vector<1x64xf32>
    %cst_10 = arith.constant dense<0.000000e+00> : vector<64x64xf32>
    %10 = tpu.matmul %7, %8, %cst_10 {dimension_numbers = #tpu.dot_dimension_numbers<[1], [0], [0], [1], [0, 0, 1, 1], [], []>} : vector<64x64xf32>, vector<64x64xf32>, vector<64x64xf32> -> vector<64x64xf32>
    %11 = vector.broadcast %9 : vector<1x64xf32> to vector<64x64xf32>
    %12 = arith.addf %10, %11 : vector<64x64xf32>
    %cst_11 = arith.constant 0.000000e+00 : f32
    %13 = vector.broadcast %cst_11 : f32 to vector<64x64xf32>
    %14 = arith.maximumf %12, %13 : vector<64x64xf32>
    %c0_12 = arith.constant 0 : index
    %c0_13 = arith.constant 0 : index
    %15 = vector.load %arg6[%c0_12, %c0_13] : memref<64x16xf32, #tpu.memory_space<vmem>>, vector<64x16xf32>
    %c0_14 = arith.constant 0 : index
    %c0_15 = arith.constant 0 : index
    %16 = vector.load %arg7[%c0_14, %c0_15] : memref<1x16xf32, #tpu.memory_space<vmem>>, vector<1x16xf32>
    %cst_16 = arith.constant dense<0.000000e+00> : vector<64x16xf32>
    %17 = tpu.matmul %14, %15, %cst_16 {dimension_numbers = #tpu.dot_dimension_numbers<[1], [0], [0], [1], [0, 0, 1, 1], [], []>} : vector<64x64xf32>, vector<64x16xf32>, vector<64x16xf32> -> vector<64x16xf32>
    %18 = vector.broadcast %16 : vector<1x16xf32> to vector<64x16xf32>
    %19 = arith.addf %17, %18 : vector<64x16xf32>
    %20 = arith.negf %19 : vector<64x16xf32>
    %21 = math.exp %20 : vector<64x16xf32>
    %cst_17 = arith.constant 1.000000e+00 : f32
    %22 = vector.broadcast %cst_17 : f32 to vector<64x16xf32>
    %23 = arith.addf %22, %21 : vector<64x16xf32>
    %24 = arith.divf %22, %23 : vector<64x16xf32>
    %25 = vector.shape_cast %24 : vector<64x16xf32> to vector<8x128xf32>
    %c0_18 = arith.constant 0 : index
    %c0_19 = arith.constant 0 : index
    %26 = vector.load %arg8[%c0_18, %c0_19] : memref<8x128xf32, #tpu.memory_space<vmem>>, vector<8x128xf32>
    tpu.vector_store %arg8[%c0_18, %c0_19], %25 {strides = array<i32>} : memref<8x128xf32, #tpu.memory_space<vmem>>, vector<8x128xf32>,
    return
  }
  func.func @transform_0(%arg0: i32) -> (i32, i32) {
    %c0_i32 = arith.constant 0 : i32
    %c0_i32_0 = arith.constant 0 : i32
    return %arg0, %c0_i32 : i32, i32
  }
  func.func @transform_1(%arg0: i32) -> (i32, i32) {
    %c0_i32 = arith.constant 0 : i32
    %c0_i32_0 = arith.constant 0 : i32
    %c0_i32_1 = arith.constant 0 : i32
    return %c0_i32, %c0_i32_0 : i32, i32
  }
  func.func @transform_2(%arg0: i32) -> (i32, i32) {
    %c0_i32 = arith.constant 0 : i32
    %c0_i32_0 = arith.constant 0 : i32
    %c0_i32_1 = arith.constant 0 : i32
    return %c0_i32, %c0_i32_0 : i32, i32
  }
  func.func @transform_3(%arg0: i32) -> (i32, i32) {
    %c0_i32 = arith.constant 0 : i32
    %c0_i32_0 = arith.constant 0 : i32
    %c0_i32_1 = arith.constant 0 : i32
    return %c0_i32, %c0_i32_0 : i32, i32
  }
  func.func @transform_4(%arg0: i32) -> (i32, i32) {
    %c0_i32 = arith.constant 0 : i32
    %c0_i32_0 = arith.constant 0 : i32
    %c0_i32_1 = arith.constant 0 : i32
    return %c0_i32, %c0_i32_0 : i32, i32
  }
  func.func @transform_5(%arg0: i32) -> (i32, i32) {
    %c0_i32 = arith.constant 0 : i32
    %c0_i32_0 = arith.constant 0 : i32
    %c0_i32_1 = arith.constant 0 : i32
    return %c0_i32, %c0_i32_0 : i32, i32
  }
  func.func @transform_6(%arg0: i32) -> (i32, i32) {
    %c0_i32 = arith.constant 0 : i32
    %c0_i32_0 = arith.constant 0 : i32
    %c0_i32_1 = arith.constant 0 : i32
    return %c0_i32, %c0_i32_0 : i32, i32
  }
  func.func @transform_7(%arg0: i32) -> (i32, i32) {
    %c0_i32 = arith.constant 0 : i32
    %c0_i32_0 = arith.constant 0 : i32
    return %arg0, %c0_i32 : i32, i32
  }
}

module attributes {stable_mosaic.version = 11 : i64} {
  func.func @_mlp_sigmoid_kernel(%arg0: i32, %arg1: memref<64x32xf32, #tpu.memory_space<vmem>>, %arg2: memref<32x64xf32, #tpu.memory_space<vmem>>, %arg3: memref<1x64xf32, #tpu.memory_space<vmem>>, %arg4: memref<64x64xf32, #tpu.memory_space<vmem>>, %arg5: memref<1x64xf32, #tpu.memory_space<vmem>>, %arg6: memref<64x16xf32, #tpu.memory_space<vmem>>, %arg7: memref<1x16xf32, #tpu.memory_space<vmem>>, %arg8: memref<64x16xf32, #tpu.memory_space<vmem>>) attributes {dimension_semantics = [#tpu.dimension_semantics<parallel>], iteration_bounds = array<i64: 1>, scalar_prefetch = 0 : i64, scratch_operands = 0 : i64, tpu.core_type = #tpu.core_type<tc>, window_params = [{transform_indices = @transform_0, window_bounds = array<i64: 64, 32>}, {pipeline_mode = #tpu.pipeline_mode<synchronous>, transform_indices = @transform_1, window_bounds = array<i64: 32, 64>}, {pipeline_mode = #tpu.pipeline_mode<synchronous>, transform_indices = @transform_2, window_bounds = array<i64: 1, 64>}, {pipeline_mode = #tpu.pipeline_mode<synchronous>, transform_indices = @transform_3, window_bounds = array<i64: 64, 64>}, {pipeline_mode = #tpu.pipeline_mode<synchronous>, transform_indices = @transform_4, window_bounds = array<i64: 1, 64>}, {pipeline_mode = #tpu.pipeline_mode<synchronous>, transform_indices = @transform_5, window_bounds = array<i64: 64, 16>}, {pipeline_mode = #tpu.pipeline_mode<synchronous>, transform_indices = @transform_6, window_bounds = array<i64: 1, 16>}, {transform_indices = @transform_7, window_bounds = array<i64: 64, 16>}]} {
    %c0 = arith.constant 0 : index
    %c0_0 = arith.constant 0 : index
    %0 = vector.load %arg1[%c0, %c0_0] : memref<64x32xf32, #tpu.memory_space<vmem>>, vector<64x32xf32>
    %c0_1 = arith.constant 0 : index
    %c0_2 = arith.constant 0 : index
    %1 = vector.load %arg2[%c0_1, %c0_2] : memref<32x64xf32, #tpu.memory_space<vmem>>, vector<32x64xf32>
    %c0_3 = arith.constant 0 : index
    %c0_4 = arith.constant 0 : index
    %2 = vector.load %arg3[%c0_3, %c0_4] : memref<1x64xf32, #tpu.memory_space<vmem>>, vector<1x64xf32>
    %cst = arith.constant dense<0.000000e+00> : vector<64x64xf32>
    %3 = tpu.matmul %0, %1, %cst {dimension_numbers = #tpu.dot_dimension_numbers<[1], [0], [0], [1], [0, 0, 1, 1], [], []>} : vector<64x32xf32>, vector<32x64xf32>, vector<64x64xf32> -> vector<64x64xf32>
    %4 = vector.broadcast %2 : vector<1x64xf32> to vector<64x64xf32>
    %5 = arith.addf %3, %4 : vector<64x64xf32>
    %cst_5 = arith.constant 0.000000e+00 : f32
    %6 = vector.broadcast %cst_5 : f32 to vector<64x64xf32>
    %7 = arith.maximumf %5, %6 : vector<64x64xf32>
    %c0_6 = arith.constant 0 : index
    %c0_7 = arith.constant 0 : index
    %8 = vector.load %arg4[%c0_6, %c0_7] : memref<64x64xf32, #tpu.memory_space<vmem>>, vector<64x64xf32>
    %c0_8 = arith.constant 0 : index
    %c0_9 = arith.constant 0 : index
    %9 = vector.load %arg5[%c0_8, %c0_9] : memref<1x64xf32, #tpu.memory_space<vmem>>, vector<1x64xf32>
    %cst_10 = arith.constant dense<0.000000e+00> : vector<64x64xf32>
    %10 = tpu.matmul %7, %8, %cst_10 {dimension_numbers = #tpu.dot_dimension_numbers<[1], [0], [0], [1], [0, 0, 1, 1], [], []>} : vector<64x64xf32>, vector<64x64xf32>, vector<64x64xf32> -> vector<64x64xf32>
    %11 = vector.broadcast %9 : vector<1x64xf32> to vector<64x64xf32>
    %12 = arith.addf %10, %11 : vector<64x64xf32>
    %cst_11 = arith.constant 0.000000e+00 : f32
    %13 = vector.broadcast %cst_11 : f32 to vector<64x64xf32>
    %14 = arith.maximumf %12, %13 : vector<64x64xf32>
    %c0_12 = arith.constant 0 : index
    %c0_13 = arith.constant 0 : index
    %15 = vector.load %arg6[%c0_12, %c0_13] : memref<64x16xf32, #tpu.memory_space<vmem>>, vector<64x16xf32>
    %c0_14 = arith.constant 0 : index
    %c0_15 = arith.constant 0 : index
    %16 = vector.load %arg7[%c0_14, %c0_15] : memref<1x16xf32, #tpu.memory_space<vmem>>, vector<1x16xf32>
    %cst_16 = arith.constant dense<0.000000e+00> : vector<64x16xf32>
    %17 = tpu.matmul %14, %15, %cst_16 {dimension_numbers = #tpu.dot_dimension_numbers<[1], [0], [0], [1], [0, 0, 1, 1], [], []>} : vector<64x64xf32>, vector<64x16xf32>, vector<64x16xf32> -> vector<64x16xf32>
    %18 = vector.broadcast %16 : vector<1x16xf32> to vector<64x16xf32>
    %19 = arith.addf %17, %18 : vector<64x16xf32>
    %20 = arith.negf %19 : vector<64x16xf32>
    %21 = math.exp %20 : vector<64x16xf32>
    %cst_17 = arith.constant 1.000000e+00 : f32
    %22 = vector.broadcast %cst_17 : f32 to vector<64x16xf32>
    %23 = arith.addf %22, %21 : vector<64x16xf32>
    %24 = arith.divf %22, %23 : vector<64x16xf32>
    %c0_18 = arith.constant 0 : index
    %c0_19 = arith.constant 0 : index
    %25 = vector.load %arg8[%c0_18, %c0_19] : memref<64x16xf32, #tpu.memory_space<vmem>>, vector<64x16xf32>
    tpu.vector_store %arg8[%c0_18, %c0_19], %24 {strides = array<i32>} : memref<64x16xf32, #tpu.memory_space<vmem>>, vector<64x16xf32>,
    return
  }
  func.func @transform_0(%arg0: i32) -> (i32, i32) {
    %c0_i32 = arith.constant 0 : i32
    %c0_i32_0 = arith.constant 0 : i32
    return %arg0, %c0_i32 : i32, i32
  }
  func.func @transform_1(%arg0: i32) -> (i32, i32) {
    %c0_i32 = arith.constant 0 : i32
    %c0_i32_0 = arith.constant 0 : i32
    %c0_i32_1 = arith.constant 0 : i32
    return %c0_i32, %c0_i32_0 : i32, i32
  }
  func.func @transform_2(%arg0: i32) -> (i32, i32) {
    %c0_i32 = arith.constant 0 : i32
    %c0_i32_0 = arith.constant 0 : i32
    %c0_i32_1 = arith.constant 0 : i32
    return %c0_i32, %c0_i32_0 : i32, i32
  }
  func.func @transform_3(%arg0: i32) -> (i32, i32) {
    %c0_i32 = arith.constant 0 : i32
    %c0_i32_0 = arith.constant 0 : i32
    %c0_i32_1 = arith.constant 0 : i32
    return %c0_i32, %c0_i32_0 : i32, i32
  }
  func.func @transform_4(%arg0: i32) -> (i32, i32) {
    %c0_i32 = arith.constant 0 : i32
    %c0_i32_0 = arith.constant 0 : i32
    %c0_i32_1 = arith.constant 0 : i32
    return %c0_i32, %c0_i32_0 : i32, i32
  }
  func.func @transform_5(%arg0: i32) -> (i32, i32) {
    %c0_i32 = arith.constant 0 : i32
    %c0_i32_0 = arith.constant 0 : i32
    %c0_i32_1 = arith.constant 0 : i32
    return %c0_i32, %c0_i32_0 : i32, i32
  }
  func.func @transform_6(%arg0: i32) -> (i32, i32) {
    %c0_i32 = arith.constant 0 : i32
    %c0_i32_0 = arith.constant 0 : i32
    %c0_i32_1 = arith.constant 0 : i32
    return %c0_i32, %c0_i32_0 : i32, i32
  }
  func.func @transform_7(%arg0: i32) -> (i32, i32) {
    %c0_i32 = arith.constant 0 : i32
    %c0_i32_0 = arith.constant 0 : i32
    return %arg0, %c0_i32 : i32, i32
  }
}

module attributes {stable_mosaic.version = 11 : i64} {
  func.func @_mlp_sigmoid_kernel(%arg0: i32, %arg1: memref<64x32xf32, #tpu.memory_space<vmem>>, %arg2: memref<32x64xf32, #tpu.memory_space<vmem>>, %arg3: memref<1x64xf32, #tpu.memory_space<vmem>>, %arg4: memref<64x64xf32, #tpu.memory_space<vmem>>, %arg5: memref<1x64xf32, #tpu.memory_space<vmem>>, %arg6: memref<64x16xf32, #tpu.memory_space<vmem>>, %arg7: memref<1x16xf32, #tpu.memory_space<vmem>>, %arg8: memref<64x16xf32, #tpu.memory_space<vmem>>) attributes {dimension_semantics = [#tpu.dimension_semantics<parallel>], iteration_bounds = array<i64: 1>, scalar_prefetch = 0 : i64, scratch_operands = 0 : i64, tpu.core_type = #tpu.core_type<tc>, window_params = [{transform_indices = @transform_0, window_bounds = array<i64: 64, 32>}, {pipeline_mode = #tpu.pipeline_mode<synchronous>, transform_indices = @transform_1, window_bounds = array<i64: 32, 64>}, {pipeline_mode = #tpu.pipeline_mode<synchronous>, transform_indices = @transform_2, window_bounds = array<i64: 1, 64>}, {pipeline_mode = #tpu.pipeline_mode<synchronous>, transform_indices = @transform_3, window_bounds = array<i64: 64, 64>}, {pipeline_mode = #tpu.pipeline_mode<synchronous>, transform_indices = @transform_4, window_bounds = array<i64: 1, 64>}, {pipeline_mode = #tpu.pipeline_mode<synchronous>, transform_indices = @transform_5, window_bounds = array<i64: 64, 16>}, {pipeline_mode = #tpu.pipeline_mode<synchronous>, transform_indices = @transform_6, window_bounds = array<i64: 1, 16>}, {transform_indices = @transform_7, window_bounds = array<i64: 64, 16>}]} {
    %c0 = arith.constant 0 : index
    %c0_0 = arith.constant 0 : index
    %0 = vector.load %arg1[%c0, %c0_0] : memref<64x32xf32, #tpu.memory_space<vmem>>, vector<64x32xf32>
    %c0_1 = arith.constant 0 : index
    %c0_2 = arith.constant 0 : index
    %1 = vector.load %arg2[%c0_1, %c0_2] : memref<32x64xf32, #tpu.memory_space<vmem>>, vector<32x64xf32>
    %c0_3 = arith.constant 0 : index
    %c0_4 = arith.constant 0 : index
    %2 = vector.load %arg3[%c0_3, %c0_4] : memref<1x64xf32, #tpu.memory_space<vmem>>, vector<1x64xf32>
    %cst = arith.constant dense<0.000000e+00> : vector<64x64xf32>
    %3 = tpu.matmul %0, %1, %cst {dimension_numbers = #tpu.dot_dimension_numbers<[1], [0], [0], [1], [0, 0, 1, 1], [], []>} : vector<64x32xf32>, vector<32x64xf32>, vector<64x64xf32> -> vector<64x64xf32>
    %4 = vector.broadcast %2 : vector<1x64xf32> to vector<64x64xf32>
    %5 = arith.addf %3, %4 : vector<64x64xf32>
    %cst_5 = arith.constant 0.000000e+00 : f32
    %6 = vector.broadcast %cst_5 : f32 to vector<64x64xf32>
    %7 = arith.maximumf %5, %6 : vector<64x64xf32>
    %c0_6 = arith.constant 0 : index
    %c0_7 = arith.constant 0 : index
    %8 = vector.load %arg4[%c0_6, %c0_7] : memref<64x64xf32, #tpu.memory_space<vmem>>, vector<64x64xf32>
    %c0_8 = arith.constant 0 : index
    %c0_9 = arith.constant 0 : index
    %9 = vector.load %arg5[%c0_8, %c0_9] : memref<1x64xf32, #tpu.memory_space<vmem>>, vector<1x64xf32>
    %cst_10 = arith.constant dense<0.000000e+00> : vector<64x64xf32>
    %10 = tpu.matmul %7, %8, %cst_10 {dimension_numbers = #tpu.dot_dimension_numbers<[1], [0], [0], [1], [0, 0, 1, 1], [], []>} : vector<64x64xf32>, vector<64x64xf32>, vector<64x64xf32> -> vector<64x64xf32>
    %11 = vector.broadcast %9 : vector<1x64xf32> to vector<64x64xf32>
    %12 = arith.addf %10, %11 : vector<64x64xf32>
    %cst_11 = arith.constant 0.000000e+00 : f32
    %13 = vector.broadcast %cst_11 : f32 to vector<64x64xf32>
    %14 = arith.maximumf %12, %13 : vector<64x64xf32>
    %c0_12 = arith.constant 0 : index
    %c0_13 = arith.constant 0 : index
    %15 = vector.load %arg6[%c0_12, %c0_13] : memref<64x16xf32, #tpu.memory_space<vmem>>, vector<64x16xf32>
    %c0_14 = arith.constant 0 : index
    %c0_15 = arith.constant 0 : index
    %16 = vector.load %arg7[%c0_14, %c0_15] : memref<1x16xf32, #tpu.memory_space<vmem>>, vector<1x16xf32>
    %cst_16 = arith.constant dense<0.000000e+00> : vector<64x16xf32>
    %17 = tpu.matmul %14, %15, %cst_16 {dimension_numbers = #tpu.dot_dimension_numbers<[1], [0], [0], [1], [0, 0, 1, 1], [], []>} : vector<64x64xf32>, vector<64x16xf32>, vector<64x16xf32> -> vector<64x16xf32>
    %18 = vector.broadcast %16 : vector<1x16xf32> to vector<64x16xf32>
    %19 = arith.addf %17, %18 : vector<64x16xf32>
    %20 = arith.negf %19 : vector<64x16xf32>
    %21 = math.exp %20 : vector<64x16xf32>
    %cst_17 = arith.constant 1.000000e+00 : f32
    %22 = vector.broadcast %cst_17 : f32 to vector<64x16xf32>
    %23 = arith.addf %22, %21 : vector<64x16xf32>
    %24 = arith.divf %22, %23 : vector<64x16xf32>
    %c0_18 = arith.constant 0 : index
    %c0_19 = arith.constant 0 : index
    %25 = vector.load %arg8[%c0_18, %c0_19] : memref<64x16xf32, #tpu.memory_space<vmem>>, vector<64x16xf32>
    tpu.vector_store %arg8[%c0_18, %c0_19], %24 {strides = array<i32>} : memref<64x16xf32, #tpu.memory_space<vmem>>, vector<64x16xf32>,
    return
  }
  func.func @transform_0(%arg0: i32) -> (i32, i32) {
    %c0_i32 = arith.constant 0 : i32
    %c0_i32_0 = arith.constant 0 : i32
    return %arg0, %c0_i32 : i32, i32
  }
  func.func @transform_1(%arg0: i32) -> (i32, i32) {
    %c0_i32 = arith.constant 0 : i32
    %c0_i32_0 = arith.constant 0 : i32
    %c0_i32_1 = arith.constant 0 : i32
    return %c0_i32, %c0_i32_0 : i32, i32
  }
  func.func @transform_2(%arg0: i32) -> (i32, i32) {
    %c0_i32 = arith.constant 0 : i32
    %c0_i32_0 = arith.constant 0 : i32
    %c0_i32_1 = arith.constant 0 : i32
    return %c0_i32, %c0_i32_0 : i32, i32
  }
  func.func @transform_3(%arg0: i32) -> (i32, i32) {
    %c0_i32 = arith.constant 0 : i32
    %c0_i32_0 = arith.constant 0 : i32
    %c0_i32_1 = arith.constant 0 : i32
    return %c0_i32, %c0_i32_0 : i32, i32
  }
  func.func @transform_4(%arg0: i32) -> (i32, i32) {
    %c0_i32 = arith.constant 0 : i32
    %c0_i32_0 = arith.constant 0 : i32
    %c0_i32_1 = arith.constant 0 : i32
    return %c0_i32, %c0_i32_0 : i32, i32
  }
  func.func @transform_5(%arg0: i32) -> (i32, i32) {
    %c0_i32 = arith.constant 0 : i32
    %c0_i32_0 = arith.constant 0 : i32
    %c0_i32_1 = arith.constant 0 : i32
    return %c0_i32, %c0_i32_0 : i32, i32
  }
  func.func @transform_6(%arg0: i32) -> (i32, i32) {
    %c0_i32 = arith.constant 0 : i32
    %c0_i32_0 = arith.constant 0 : i32
    %c0_i32_1 = arith.constant 0 : i32
    return %c0_i32, %c0_i32_0 : i32, i32
  }
  func.func @transform_7(%arg0: i32) -> (i32, i32) {
    %c0_i32 = arith.constant 0 : i32
    %c0_i32_0 = arith.constant 0 : i32
    return %arg0, %c0_i32 : i32, i32
  }
}

</mosaic_0001>

<bundles_post_ra>
// kernel: tpu_custom_call.1
= control target key start
LH: loop header
LB: loop body
LE: loop exit
PB: predicated region body
PF: predicated region fallthrough
CT: control target
= control target key end

     0   :  { %vm45_vm0 = vcmask 261120   ;;  %vm198_vm1 = vcmask 523264   ;;  %vm528_vm2 = vcmask 130048   ;;  %s933_s1 = inlined_call_operand.vmem [shape: f32[32,64], index: 1, kind: input, shape index: {}]   ;;  %s934_s0 = inlined_call_operand.vmem [shape: f32[64,32], index: 0, kind: input, shape index: {}]   ;;  %s935_s3 = inlined_call_operand.vmem [shape: f32[64,64], index: 3, kind: input, shape index: {}]   ;;  %s936_s5 = inlined_call_operand.vmem [shape: f32[64,16], index: 5, kind: input, shape index: {}]   ;;  %s937_s2 = inlined_call_operand.vmem [shape: f32[1,64], index: 2, kind: input, shape index: {}]   ;;  %s938_s4 = inlined_call_operand.vmem [shape: f32[1,64], index: 4, kind: input, shape index: {}]   ;;  %s939_s6 = inlined_call_operand.vmem [shape: f32[1,16], index: 6, kind: input, shape index: {}]   ;;  %s940_s7 = inlined_call_operand.vmem [shape: f32[64,16], index: 7, kind: output, shape index: {}]  }
   0x1   :  { %v37_v0 = vld [vmem:[%s933_s1 + $0x18] sm:$0xff]  ;;  %v36_v1 = vld [vmem:[%s933_s1 + $0x10] sm:$0xff]  ;;  %v26_v2 = vld [vmem:[%s934_s0] sm:$0xff] }
   0x2   :  { %620 = vmatprep.subr.mxu0 %v37_v0  ;;  %v35_v3 = vld [vmem:[%s933_s1 + $0x8] sm:$0xff]  ;;  %628 = vmatprep.mubr.msk.f32.mxu0 %vm45_vm0, %v26_v2  ;;  %v34_v4 = vld [vmem:[%s933_s1] sm:$0xff]  ;;  %v190_v5 = vld [vmem:[%s935_s3 + $0x38] sm:$0xff] }
   0x3   :  { %621 = vmatpush3.msra.mxu0 %v37_v0  ;;  %v189_v6 = vld [vmem:[%s935_s3 + $0x30] sm:$0xff]  ;;  %640 = vmatprep.subr.mxu1 %v190_v5  ;;  %v27_v7 = vld [vmem:[%s934_s0 + $0x8] sm:$0xff]  ;;  %v187_v10 = vld [vmem:[%s935_s3 + $0x20] sm:$0xff] }
   0x4   :  { %622 = vmatprep.subr.mxu0 %v36_v1  ;;  %641 = vmatpush3.msra.mxu1 %v190_v5  ;;  %v188_v8 = vld [vmem:[%s935_s3 + $0x28] sm:$0xff]  ;;  %v28_v9 = vld [vmem:[%s934_s0 + $0x10] sm:$0xff]  ;;  %v29_v11 = vld [vmem:[%s934_s0 + $0x18] sm:$0xff] }
   0x5   :  { %623 = vmatpush3.msra.mxu0 %v36_v1  ;;  %642 = vmatprep.subr.mxu1 %v189_v6  ;;  %v30_v12 = vld [vmem:[%s934_s0 + $0x20] sm:$0xff]  ;;  %v31_v13 = vld [vmem:[%s934_s0 + $0x28] sm:$0xff]  ;;  %v32_v14 = vld [vmem:[%s934_s0 + $0x30] sm:$0xff] }
   0x6   :  { %624 = vmatprep.subr.mxu0 %v35_v3  ;;  %643 = vmatpush3.msra.mxu1 %v189_v6  ;;  %v33_v15 = vld [vmem:[%s934_s0 + $0x38] sm:$0xff]  ;;  %v185_v17 = vld [vmem:[%s935_s3 + $0x10] sm:$0xff]  ;;  %v184_v18 = vld [vmem:[%s935_s3 + $0x8] sm:$0xff] }
   0x7   :  { %625 = vmatpush3.msra.mxu0 %v35_v3  ;;  %644 = vmatprep.subr.mxu1 %v188_v8  ;;  %v186_v16 = vld [vmem:[%s935_s3 + $0x18] sm:$0xff]  ;;  %v183_v19 = vld [vmem:[%s935_s3] sm:$0xff]  ;;  %v342_v21 = vld [vmem:[%s936_s5 + $0x30] sm:$0xff] }
   0x8   :  { %626 = vmatprep.subr.mxu0 %v34_v4  ;;  %645 = vmatpush3.msra.mxu1 %v188_v8  ;;  %v343_v20 = vld [vmem:[%s936_s5 + $0x38] sm:$0xff]  ;;  %v341_v22 = vld [vmem:[%s936_s5 + $0x28] sm:$0xff]  ;;  %v340_v23 = vld [vmem:[%s936_s5 + $0x20] sm:$0xff] }
   0x9   :  { %627 = vmatpush3.msra.mxu0 %v34_v4  ;;  %646 = vmatprep.subr.mxu1 %v187_v10  ;;  %v541_v24 = vld [vmem:[%s937_s2] ss:$0 sm:$0xff]  ;;  %v339_v49 = vld [vmem:[%s936_s5 + $0x18] sm:$0xff]  ;;  %v338_v50 = vld [vmem:[%s936_s5 + $0x10] sm:$0xff] }
   0xa   :  { %629 = vmatmul.mubr.msk.f32.vlgmr.msra.gmra.mxu0 %vm45_vm0, %v27_v7  ;;  %647 = vmatpush3.msra.mxu1 %v187_v10  ;;  %v337_v51 = vld [vmem:[%s936_s5 + $0x8] sm:$0xff]  ;;  %v336_v52 = vld [vmem:[%s936_s5] sm:$0xff] }
   0xb   :  { %631 = vmatprep.mubr.msk.f32.mxu0 %vm45_vm0, %v28_v9  ;;  %648 = vmatprep.subr.mxu1 %v186_v16  ;;  %v550_v53 = vld [vmem:[%s938_s4] ss:$0 sm:$0xff] }
   0xc   :  { %649 = vmatpush3.msra.mxu1 %v186_v16  ;;  %668 = vmatprep.subr.mxu0 %v343_v20 }
   0xd   :  { %650 = vmatprep.subr.mxu1 %v185_v17  ;;  %669 = vmatpush3.msra.mxu0 %v343_v20 }
   0xe   :  { %632 = vmatmul.mubr.msk.f32.gmra.mxu0 %vm45_vm0, %v29_v11  ;;  %651 = vmatpush3.msra.mxu1 %v185_v17 }
   0xf   :  { %634 = vmatprep.mubr.msk.f32.mxu0 %vm45_vm0, %v30_v12  ;;  %652 = vmatprep.subr.mxu1 %v184_v18 }
  0x10   :  { %653 = vmatpush3.msra.mxu1 %v184_v18  ;;  %670 = vmatprep.subr.mxu0 %v342_v21 }
  0x11   :  { %654 = vmatprep.subr.mxu1 %v183_v19  ;;  %671 = vmatpush3.msra.mxu0 %v342_v21 }
  0x12   :  { %635 = vmatmul.mubr.msk.f32.gmra.mxu0 %vm45_vm0, %v31_v13  ;;  %655 = vmatpush3.msra.mxu1 %v183_v19 }
  0x13   :  { %637 = vmatprep.mubr.msk.f32.mxu0 %vm45_vm0, %v32_v14  ;;  %696 = vmatprep.subr.mxu1 %v343_v20  ;;  %v559_v14 = vld [vmem:[%s939_s6] ss:$0 sm:$0xff] }
  0x14   :  { %672 = vmatprep.subr.mxu0 %v341_v22 }
  0x15   :  { %673 = vmatpush3.msra.mxu0 %v341_v22 }
  0x16   :  { %638 = vmatmul.mubr.msk.f32.gmra.mxu0 %vm45_vm0, %v33_v15  ;;  %674 = vmatprep.subr.mxu0 %v340_v23 }
  0x17   :  { %675 = vmatpush3.msra.mxu0 %v340_v23 }
  0x18   :  { %676 = vmatprep.subr.mxu0 %v339_v49 }
  0x19   :  { %677 = vmatpush3.msra.mxu0 %v339_v49 }
  0x1a   :  { %678 = vmatprep.subr.mxu0 %v338_v50 }
  0x1b   :  { %679 = vmatpush3.msra.mxu0 %v338_v50 }
  0x1c   :  { %680 = vmatprep.subr.mxu0 %v337_v51 }
  0x1d   :  { %681 = vmatpush3.msra.mxu0 %v337_v51 }
  0x1e   :  { %682 = vmatprep.subr.mxu0 %v336_v52 }
  0x1f   :  { %683 = vmatpush3.msra.mxu0 %v336_v52 }
  0xca   :  { %v630_v25 = vpop.f32.mrf.mxu0 }
  0xcb   :  { %v142_v26 = vadd.f32 %v630_v25, %v541_v24 }
  0xcc   :  { %v136_v27 = vpop.f32.mrf.mxu0 }
  0xcd   :  { %v137_v28 = vadd.f32 %v541_v24, %v136_v27  ;;  %v176_v31 = vmax.f32 %v142_v26, 0.0 }
  0xce   :  { %v633_v29 = vpop.f32.mrf.mxu0 }
  0xcf   :  { %v175_v30 = vmax.f32 %v137_v28, 0.0  ;;  %v152_v32 = vadd.f32 %v633_v29, %v541_v24 }
  0xd0   :  { %v146_v33 = vpop.f32.mrf.mxu0 }
  0xd1   :  { %v147_v34 = vadd.f32 %v541_v24, %v146_v33  ;;  %656 = vmatprep.mubr.msk.f32.mxu1 %vm198_vm1, %v175_v30  ;;  %v178_v37 = vmax.f32 %v152_v32, 0.0 }
  0xd2   :  { %v636_v35 = vpop.f32.mrf.mxu0  ;;  %657 = vmatmul.mubr.msk.f32.vlgmr.msra.gmra.mxu1 %vm198_vm1, %v176_v31 }
  0xd3   :  { %v177_v36 = vmax.f32 %v147_v34, 0.0  ;;  %704 = vmatpush3.msra.mxu1 %v343_v20  ;;  %v162_v38 = vadd.f32 %v636_v35, %v541_v24 }
  0xd4   :  { %v156_v39 = vpop.f32.mrf.mxu0  ;;  %697 = vmatprep.subr.mxu1 %v342_v21 }
  0xd5   :  { %v157_v40 = vadd.f32 %v541_v24, %v156_v39  ;;  %659 = vmatprep.mubr.msk.f32.mxu1 %vm198_vm1, %v177_v36  ;;  %705 = vmatpush3.msra.mxu1 %v342_v21  ;;  %v180_v43 = vmax.f32 %v162_v38, 0.0 }
  0xd6   :  { %v639_v41 = vpop.f32.mrf.mxu0  ;;  %660 = vmatmul.mubr.msk.f32.gmra.mxu1 %vm198_vm1, %v178_v37  ;;  %698 = vmatprep.subr.mxu1 %v341_v22 }
  0xd7   :  { %v179_v42 = vmax.f32 %v157_v40, 0.0  ;;  %706 = vmatpush3.msra.mxu1 %v341_v22  ;;  %v172_v44 = vadd.f32 %v639_v41, %v541_v24 }
  0xd8   :  { %v166_v45 = vpop.f32.mrf.mxu0  ;;  %699 = vmatprep.subr.mxu1 %v340_v23 }
  0xd9   :  { %v167_v46 = vadd.f32 %v541_v24, %v166_v45  ;;  %662 = vmatprep.mubr.msk.f32.mxu1 %vm198_vm1, %v179_v42  ;;  %707 = vmatpush3.msra.mxu1 %v340_v23  ;;  %v182_v48 = vmax.f32 %v172_v44, 0.0 }
  0xda   :  { %663 = vmatmul.mubr.msk.f32.gmra.mxu1 %vm198_vm1, %v180_v43  ;;  %700 = vmatprep.subr.mxu1 %v339_v49 }
  0xdb   :  { %v181_v47 = vmax.f32 %v167_v46, 0.0  ;;  %708 = vmatpush3.msra.mxu1 %v339_v49 }
  0xdc   :  { %701 = vmatprep.subr.mxu1 %v338_v50 }
  0xdd   :  { %665 = vmatprep.mubr.msk.f32.mxu1 %vm198_vm1, %v181_v47  ;;  %709 = vmatpush3.msra.mxu1 %v338_v50 }
  0xde   :  { %666 = vmatmul.mubr.msk.f32.gmra.mxu1 %vm198_vm1, %v182_v48  ;;  %702 = vmatprep.subr.mxu1 %v337_v51 }
  0xdf   :  { %710 = vmatpush3.msra.mxu1 %v337_v51 }
  0xe0   :  { %703 = vmatprep.subr.mxu1 %v336_v52 }
  0xe1   :  { %711 = vmatpush3.msra.mxu1 %v336_v52 }
 0x192   :  { %v658_v54 = vpop.f32.mrf.mxu1 }
 0x193   :  { %v295_v55 = vadd.f32 %v658_v54, %v550_v53 }
 0x194   :  { %v289_v56 = vpop.f32.mrf.mxu1 }
 0x195   :  { %v290_v57 = vadd.f32 %v550_v53, %v289_v56  ;;  %v329_v60 = vmax.f32 %v295_v55, 0.0 }
 0x196   :  { %v661_v58 = vpop.f32.mrf.mxu1 }
 0x197   :  { %v328_v59 = vmax.f32 %v290_v57, 0.0  ;;  %v305_v61 = vadd.f32 %v661_v58, %v550_v53 }
 0x198   :  { %v299_v62 = vpop.f32.mrf.mxu1 }
 0x199   :  { %v300_v63 = vadd.f32 %v550_v53, %v299_v62  ;;  %684 = vmatprep.mubr.msk.f32.mxu0 %vm198_vm1, %v328_v59  ;;  %v331_v2 = vmax.f32 %v305_v61, 0.0 }
 0x19a   :  { %v664_v0 = vpop.f32.mrf.mxu1  ;;  %685 = vmatmul.mubr.msk.f32.vlgmr.msra.gmra.mxu0 %vm198_vm1, %v329_v60 }
 0x19b   :  { %v330_v1 = vmax.f32 %v300_v63, 0.0  ;;  %v315_v3 = vadd.f32 %v664_v0, %v550_v53 }
 0x19c   :  { %v309_v4 = vpop.f32.mrf.mxu1 }
 0x19d   :  { %v310_v5 = vadd.f32 %v550_v53, %v309_v4  ;;  %687 = vmatprep.mubr.msk.f32.mxu0 %vm198_vm1, %v330_v1  ;;  %v333_v8 = vmax.f32 %v315_v3, 0.0 }
 0x19e   :  { %v667_v6 = vpop.f32.mrf.mxu1  ;;  %688 = vmatmul.mubr.msk.f32.gmra.mxu0 %vm198_vm1, %v331_v2 }
 0x19f   :  { %v332_v7 = vmax.f32 %v310_v5, 0.0  ;;  %v325_v9 = vadd.f32 %v667_v6, %v550_v53 }
 0x1a0   :  { %v319_v10 = vpop.f32.mrf.mxu1 }
 0x1a1   :  { %v320_v11 = vadd.f32 %v550_v53, %v319_v10  ;;  %690 = vmatprep.mubr.msk.f32.mxu0 %vm198_vm1, %v332_v7  ;;  %v335_v13 = vmax.f32 %v325_v9, 0.0 }
 0x1a2   :  { %691 = vmatmul.mubr.msk.f32.gmra.mxu0 %vm198_vm1, %v333_v8 }
 0x1a3   :  { %v334_v12 = vmax.f32 %v320_v11, 0.0 }
 0x1a5   :  { %693 = vmatprep.mubr.msk.f32.mxu1 %vm198_vm1, %v334_v12 }
 0x1a6   :  { %694 = vmatmul.mubr.msk.f32.vlgmr.msra.gmra.mxu1 %vm198_vm1, %v335_v13 }
 0x25a   :  { %v686_v15 = vpop.f32.mrf.mxu0 }
 0x25b   :  { %v447_v16 = vadd.f32 %v686_v15, %v559_v14 }
 0x25c   :  { %v441_v17 = vpop.f32.mrf.mxu0 }
 0x25d   :  { %v569_v18 = vmul.f32 -1.442695, %v447_v16  ;;  %v442_v19 = vadd.f32 %v559_v14, %v441_v17 }
 0x25e   :  { %v689_v20 = vpop.f32.mrf.mxu0 }
 0x25f   :  { %712 = vpow2.f32 %v569_v18  ;;  %v568_v21 = vmul.f32 -1.442695, %v442_v19  ;;  %v457_v22 = vadd.f32 %v689_v20, %v559_v14 }
 0x260   :  { %v451_v23 = vpop.f32.mrf.mxu0 }
 0x261   :  { %714 = vpow2.f32 %v568_v21  ;;  %v571_v24 = vmul.f32 -1.442695, %v457_v22  ;;  %v452_v25 = vadd.f32 %v559_v14, %v451_v23 }
 0x262   :  { %v692_v26 = vpop.f32.mrf.mxu0 }
 0x263   :  { %716 = vpow2.f32 %v571_v24  ;;  %v570_v27 = vmul.f32 -1.442695, %v452_v25  ;;  %v467_v28 = vadd.f32 %v692_v26, %v559_v14 }
 0x264   :  { %v461_v29 = vpop.f32.mrf.mxu0 }
 0x265   :  { %718 = vpow2.f32 %v570_v27  ;;  %v573_v30 = vmul.f32 -1.442695, %v467_v28  ;;  %v462_v31 = vadd.f32 %v559_v14, %v461_v29 }
 0x266   :  { %v695_v32 = vpop.f32.mrf.mxu1 }
 0x267   :  { %720 = vpow2.f32 %v573_v30  ;;  %v572_v33 = vmul.f32 -1.442695, %v462_v31  ;;  %v477_v34 = vadd.f32 %v695_v32, %v559_v14 }
 0x268   :  { %v471_v35 = vpop.f32.mrf.mxu1 }
 0x269   :  { %722 = vpow2.f32 %v572_v33  ;;  %v575_v36 = vmul.f32 -1.442695, %v477_v34  ;;  %v472_v37 = vadd.f32 %v559_v14, %v471_v35 }
 0x26b   :  { %724 = vpow2.f32 %v575_v36  ;;  %v574_v38 = vmul.f32 -1.442695, %v472_v37 }
 0x26c   :  { %v713_v39 = vpop.eup %712 }
 0x26d   :  { %v505_v40 = vadd.f32 1.0, %v713_v39  ;;  %726 = vpow2.f32 %v574_v38 }
 0x26e   :  { %v715_v41 = vpop.eup %714 }
 0x26f   :  { %728 = vrcp.f32 %v505_v40  ;;  %v504_v42 = vadd.f32 1.0, %v715_v41 }
 0x270   :  { %v717_v43 = vpop.eup %716 }
 0x271   :  { %730 = vrcp.f32 %v504_v42  ;;  %v507_v44 = vadd.f32 1.0, %v717_v43 }
 0x272   :  { %v719_v45 = vpop.eup %718 }
 0x273   :  { %732 = vrcp.f32 %v507_v44  ;;  %v506_v46 = vadd.f32 1.0, %v719_v45 }
 0x274   :  { %v721_v47 = vpop.eup %720 }
 0x275   :  { %734 = vrcp.f32 %v506_v46  ;;  %v509_v48 = vadd.f32 1.0, %v721_v47 }
 0x276   :  { %v723_v49 = vpop.eup %722 }
 0x277   :  { %736 = vrcp.f32 %v509_v48  ;;  %v508_v50 = vadd.f32 1.0, %v723_v49 }
 0x278   :  { %v725_v51 = vpop.eup %724 }
 0x279   :  { %738 = vrcp.f32 %v508_v50  ;;  %v511_v52 = vadd.f32 1.0, %v725_v51 }
 0x27a   :  { %v727_v53 = vpop.eup %726 }
 0x27b   :  { %740 = vrcp.f32 %v511_v52  ;;  %v510_v54 = vadd.f32 1.0, %v727_v53 }
 0x27c   :  { %v729_v55 = vpop.eup %728 }
 0x27d   :  { %530 = vst.msk [vmem:[%s940_s7 + $0x8] sm:$0xff] %vm528_vm2, %v729_v55  ;;  %742 = vrcp.f32 %v510_v54 }
 0x27e   :  { %v731_v56 = vpop.eup %730 }
 0x27f   :  { %529 = vst.msk [vmem:[%s940_s7] sm:$0xff] %vm528_vm2, %v731_v56 }
 0x280   :  { %v733_v57 = vpop.eup %732 }
 0x281   :  { %532 = vst.msk [vmem:[%s940_s7 + $0x18] sm:$0xff] %vm528_vm2, %v733_v57 }
 0x282   :  { %v735_v58 = vpop.eup %734 }
 0x283   :  { %531 = vst.msk [vmem:[%s940_s7 + $0x10] sm:$0xff] %vm528_vm2, %v735_v58 }
 0x284   :  { %v737_v59 = vpop.eup %736 }
 0x285   :  { %534 = vst.msk [vmem:[%s940_s7 + $0x28] sm:$0xff] %vm528_vm2, %v737_v59 }
 0x286   :  { %v739_v60 = vpop.eup %738 }
 0x287   :  { %533 = vst.msk [vmem:[%s940_s7 + $0x20] sm:$0xff] %vm528_vm2, %v739_v60 }
 0x288   :  { %v741_v61 = vpop.eup %740 }
 0x289   :  { %536 = vst.msk [vmem:[%s940_s7 + $0x38] sm:$0xff] %vm528_vm2, %v741_v61 }
 0x28a   :  { %v743_v62 = vpop.eup %742 }
 0x28b   :  { %535 = vst.msk [vmem:[%s940_s7 + $0x30] sm:$0xff] %vm528_vm2, %v743_v62 }

// kernel: tpu_custom_call.1
= control target key start
LH: loop header
LB: loop body
LE: loop exit
PB: predicated region body
PF: predicated region fallthrough
CT: control target
= control target key end

     0   :  { %vm45_vm0 = vcmask 261120   ;;  %vm198_vm1 = vcmask 523264   ;;  %vm528_vm2 = vcmask 130048   ;;  %s933_s1 = inlined_call_operand.vmem [shape: f32[32,64], index: 1, kind: input, shape index: {}]   ;;  %s934_s0 = inlined_call_operand.vmem [shape: f32[64,32], index: 0, kind: input, shape index: {}]   ;;  %s935_s3 = inlined_call_operand.vmem [shape: f32[64,64], index: 3, kind: input, shape index: {}]   ;;  %s936_s5 = inlined_call_operand.vmem [shape: f32[64,16], index: 5, kind: input, shape index: {}]   ;;  %s937_s2 = inlined_call_operand.vmem [shape: f32[1,64], index: 2, kind: input, shape index: {}]   ;;  %s938_s4 = inlined_call_operand.vmem [shape: f32[1,64], index: 4, kind: input, shape index: {}]   ;;  %s939_s6 = inlined_call_operand.vmem [shape: f32[1,16], index: 6, kind: input, shape index: {}]   ;;  %s940_s7 = inlined_call_operand.vmem [shape: f32[64,16], index: 7, kind: output, shape index: {}]  }
   0x1   :  { %v37_v0 = vld [vmem:[%s933_s1 + $0x18] sm:$0xff]  ;;  %v36_v1 = vld [vmem:[%s933_s1 + $0x10] sm:$0xff]  ;;  %v26_v2 = vld [vmem:[%s934_s0] sm:$0xff] }
   0x2   :  { %620 = vmatprep.subr.mxu0 %v37_v0  ;;  %v35_v3 = vld [vmem:[%s933_s1 + $0x8] sm:$0xff]  ;;  %628 = vmatprep.mubr.msk.f32.mxu0 %vm45_vm0, %v26_v2  ;;  %v34_v4 = vld [vmem:[%s933_s1] sm:$0xff]  ;;  %v190_v5 = vld [vmem:[%s935_s3 + $0x38] sm:$0xff] }
   0x3   :  { %621 = vmatpush3.msra.mxu0 %v37_v0  ;;  %v189_v6 = vld [vmem:[%s935_s3 + $0x30] sm:$0xff]  ;;  %640 = vmatprep.subr.mxu1 %v190_v5  ;;  %v27_v7 = vld [vmem:[%s934_s0 + $0x8] sm:$0xff]  ;;  %v187_v10 = vld [vmem:[%s935_s3 + $0x20] sm:$0xff] }
   0x4   :  { %622 = vmatprep.subr.mxu0 %v36_v1  ;;  %641 = vmatpush3.msra.mxu1 %v190_v5  ;;  %v188_v8 = vld [vmem:[%s935_s3 + $0x28] sm:$0xff]  ;;  %v28_v9 = vld [vmem:[%s934_s0 + $0x10] sm:$0xff]  ;;  %v29_v11 = vld [vmem:[%s934_s0 + $0x18] sm:$0xff] }
   0x5   :  { %623 = vmatpush3.msra.mxu0 %v36_v1  ;;  %642 = vmatprep.subr.mxu1 %v189_v6  ;;  %v30_v12 = vld [vmem:[%s934_s0 + $0x20] sm:$0xff]  ;;  %v31_v13 = vld [vmem:[%s934_s0 + $0x28] sm:$0xff]  ;;  %v32_v14 = vld [vmem:[%s934_s0 + $0x30] sm:$0xff] }
   0x6   :  { %624 = vmatprep.subr.mxu0 %v35_v3  ;;  %643 = vmatpush3.msra.mxu1 %v189_v6  ;;  %v33_v15 = vld [vmem:[%s934_s0 + $0x38] sm:$0xff]  ;;  %v185_v17 = vld [vmem:[%s935_s3 + $0x10] sm:$0xff]  ;;  %v184_v18 = vld [vmem:[%s935_s3 + $0x8] sm:$0xff] }
   0x7   :  { %625 = vmatpush3.msra.mxu0 %v35_v3  ;;  %644 = vmatprep.subr.mxu1 %v188_v8  ;;  %v186_v16 = vld [vmem:[%s935_s3 + $0x18] sm:$0xff]  ;;  %v183_v19 = vld [vmem:[%s935_s3] sm:$0xff]  ;;  %v342_v21 = vld [vmem:[%s936_s5 + $0x30] sm:$0xff] }
   0x8   :  { %626 = vmatprep.subr.mxu0 %v34_v4  ;;  %645 = vmatpush3.msra.mxu1 %v188_v8  ;;  %v343_v20 = vld [vmem:[%s936_s5 + $0x38] sm:$0xff]  ;;  %v341_v22 = vld [vmem:[%s936_s5 + $0x28] sm:$0xff]  ;;  %v340_v23 = vld [vmem:[%s936_s5 + $0x20] sm:$0xff] }
   0x9   :  { %627 = vmatpush3.msra.mxu0 %v34_v4  ;;  %646 = vmatprep.subr.mxu1 %v187_v10  ;;  %v541_v24 = vld [vmem:[%s937_s2] ss:$0 sm:$0xff]  ;;  %v339_v49 = vld [vmem:[%s936_s5 + $0x18] sm:$0xff]  ;;  %v338_v50 = vld [vmem:[%s936_s5 + $0x10] sm:$0xff] }
   0xa   :  { %629 = vmatmul.mubr.msk.f32.vlgmr.msra.gmra.mxu0 %vm45_vm0, %v27_v7  ;;  %647 = vmatpush3.msra.mxu1 %v187_v10  ;;  %v337_v51 = vld [vmem:[%s936_s5 + $0x8] sm:$0xff]  ;;  %v336_v52 = vld [vmem:[%s936_s5] sm:$0xff] }
   0xb   :  { %631 = vmatprep.mubr.msk.f32.mxu0 %vm45_vm0, %v28_v9  ;;  %648 = vmatprep.subr.mxu1 %v186_v16  ;;  %v550_v53 = vld [vmem:[%s938_s4] ss:$0 sm:$0xff] }
   0xc   :  { %649 = vmatpush3.msra.mxu1 %v186_v16  ;;  %668 = vmatprep.subr.mxu0 %v343_v20 }
   0xd   :  { %650 = vmatprep.subr.mxu1 %v185_v17  ;;  %669 = vmatpush3.msra.mxu0 %v343_v20 }
   0xe   :  { %632 = vmatmul.mubr.msk.f32.gmra.mxu0 %vm45_vm0, %v29_v11  ;;  %651 = vmatpush3.msra.mxu1 %v185_v17 }
   0xf   :  { %634 = vmatprep.mubr.msk.f32.mxu0 %vm45_vm0, %v30_v12  ;;  %652 = vmatprep.subr.mxu1 %v184_v18 }
  0x10   :  { %653 = vmatpush3.msra.mxu1 %v184_v18  ;;  %670 = vmatprep.subr.mxu0 %v342_v21 }
  0x11   :  { %654 = vmatprep.subr.mxu1 %v183_v19  ;;  %671 = vmatpush3.msra.mxu0 %v342_v21 }
  0x12   :  { %635 = vmatmul.mubr.msk.f32.gmra.mxu0 %vm45_vm0, %v31_v13  ;;  %655 = vmatpush3.msra.mxu1 %v183_v19 }
  0x13   :  { %637 = vmatprep.mubr.msk.f32.mxu0 %vm45_vm0, %v32_v14  ;;  %696 = vmatprep.subr.mxu1 %v343_v20  ;;  %v559_v14 = vld [vmem:[%s939_s6] ss:$0 sm:$0xff] }
  0x14   :  { %672 = vmatprep.subr.mxu0 %v341_v22 }
  0x15   :  { %673 = vmatpush3.msra.mxu0 %v341_v22 }
  0x16   :  { %638 = vmatmul.mubr.msk.f32.gmra.mxu0 %vm45_vm0, %v33_v15  ;;  %674 = vmatprep.subr.mxu0 %v340_v23 }
  0x17   :  { %675 = vmatpush3.msra.mxu0 %v340_v23 }
  0x18   :  { %676 = vmatprep.subr.mxu0 %v339_v49 }
  0x19   :  { %677 = vmatpush3.msra.mxu0 %v339_v49 }
  0x1a   :  { %678 = vmatprep.subr.mxu0 %v338_v50 }
  0x1b   :  { %679 = vmatpush3.msra.mxu0 %v338_v50 }
  0x1c   :  { %680 = vmatprep.subr.mxu0 %v337_v51 }
  0x1d   :  { %681 = vmatpush3.msra.mxu0 %v337_v51 }
  0x1e   :  { %682 = vmatprep.subr.mxu0 %v336_v52 }
  0x1f   :  { %683 = vmatpush3.msra.mxu0 %v336_v52 }
  0xca   :  { %v630_v25 = vpop.f32.mrf.mxu0 }
  0xcb   :  { %v142_v26 = vadd.f32 %v630_v25, %v541_v24 }
  0xcc   :  { %v136_v27 = vpop.f32.mrf.mxu0 }
  0xcd   :  { %v137_v28 = vadd.f32 %v541_v24, %v136_v27  ;;  %v176_v31 = vmax.f32 %v142_v26, 0.0 }
  0xce   :  { %v633_v29 = vpop.f32.mrf.mxu0 }
  0xcf   :  { %v175_v30 = vmax.f32 %v137_v28, 0.0  ;;  %v152_v32 = vadd.f32 %v633_v29, %v541_v24 }
  0xd0   :  { %v146_v33 = vpop.f32.mrf.mxu0 }
  0xd1   :  { %v147_v34 = vadd.f32 %v541_v24, %v146_v33  ;;  %656 = vmatprep.mubr.msk.f32.mxu1 %vm198_vm1, %v175_v30  ;;  %v178_v37 = vmax.f32 %v152_v32, 0.0 }
  0xd2   :  { %v636_v35 = vpop.f32.mrf.mxu0  ;;  %657 = vmatmul.mubr.msk.f32.vlgmr.msra.gmra.mxu1 %vm198_vm1, %v176_v31 }
  0xd3   :  { %v177_v36 = vmax.f32 %v147_v34, 0.0  ;;  %704 = vmatpush3.msra.mxu1 %v343_v20  ;;  %v162_v38 = vadd.f32 %v636_v35, %v541_v24 }
  0xd4   :  { %v156_v39 = vpop.f32.mrf.mxu0  ;;  %697 = vmatprep.subr.mxu1 %v342_v21 }
  0xd5   :  { %v157_v40 = vadd.f32 %v541_v24, %v156_v39  ;;  %659 = vmatprep.mubr.msk.f32.mxu1 %vm198_vm1, %v177_v36  ;;  %705 = vmatpush3.msra.mxu1 %v342_v21  ;;  %v180_v43 = vmax.f32 %v162_v38, 0.0 }
  0xd6   :  { %v639_v41 = vpop.f32.mrf.mxu0  ;;  %660 = vmatmul.mubr.msk.f32.gmra.mxu1 %vm198_vm1, %v178_v37  ;;  %698 = vmatprep.subr.mxu1 %v341_v22 }
  0xd7   :  { %v179_v42 = vmax.f32 %v157_v40, 0.0  ;;  %706 = vmatpush3.msra.mxu1 %v341_v22  ;;  %v172_v44 = vadd.f32 %v639_v41, %v541_v24 }
  0xd8   :  { %v166_v45 = vpop.f32.mrf.mxu0  ;;  %699 = vmatprep.subr.mxu1 %v340_v23 }
  0xd9   :  { %v167_v46 = vadd.f32 %v541_v24, %v166_v45  ;;  %662 = vmatprep.mubr.msk.f32.mxu1 %vm198_vm1, %v179_v42  ;;  %707 = vmatpush3.msra.mxu1 %v340_v23  ;;  %v182_v48 = vmax.f32 %v172_v44, 0.0 }
  0xda   :  { %663 = vmatmul.mubr.msk.f32.gmra.mxu1 %vm198_vm1, %v180_v43  ;;  %700 = vmatprep.subr.mxu1 %v339_v49 }
  0xdb   :  { %v181_v47 = vmax.f32 %v167_v46, 0.0  ;;  %708 = vmatpush3.msra.mxu1 %v339_v49 }
  0xdc   :  { %701 = vmatprep.subr.mxu1 %v338_v50 }
  0xdd   :  { %665 = vmatprep.mubr.msk.f32.mxu1 %vm198_vm1, %v181_v47  ;;  %709 = vmatpush3.msra.mxu1 %v338_v50 }
  0xde   :  { %666 = vmatmul.mubr.msk.f32.gmra.mxu1 %vm198_vm1, %v182_v48  ;;  %702 = vmatprep.subr.mxu1 %v337_v51 }
  0xdf   :  { %710 = vmatpush3.msra.mxu1 %v337_v51 }
  0xe0   :  { %703 = vmatprep.subr.mxu1 %v336_v52 }
  0xe1   :  { %711 = vmatpush3.msra.mxu1 %v336_v52 }
 0x192   :  { %v658_v54 = vpop.f32.mrf.mxu1 }
 0x193   :  { %v295_v55 = vadd.f32 %v658_v54, %v550_v53 }
 0x194   :  { %v289_v56 = vpop.f32.mrf.mxu1 }
 0x195   :  { %v290_v57 = vadd.f32 %v550_v53, %v289_v56  ;;  %v329_v60 = vmax.f32 %v295_v55, 0.0 }
 0x196   :  { %v661_v58 = vpop.f32.mrf.mxu1 }
 0x197   :  { %v328_v59 = vmax.f32 %v290_v57, 0.0  ;;  %v305_v61 = vadd.f32 %v661_v58, %v550_v53 }
 0x198   :  { %v299_v62 = vpop.f32.mrf.mxu1 }
 0x199   :  { %v300_v63 = vadd.f32 %v550_v53, %v299_v62  ;;  %684 = vmatprep.mubr.msk.f32.mxu0 %vm198_vm1, %v328_v59  ;;  %v331_v2 = vmax.f32 %v305_v61, 0.0 }
 0x19a   :  { %v664_v0 = vpop.f32.mrf.mxu1  ;;  %685 = vmatmul.mubr.msk.f32.vlgmr.msra.gmra.mxu0 %vm198_vm1, %v329_v60 }
 0x19b   :  { %v330_v1 = vmax.f32 %v300_v63, 0.0  ;;  %v315_v3 = vadd.f32 %v664_v0, %v550_v53 }
 0x19c   :  { %v309_v4 = vpop.f32.mrf.mxu1 }
 0x19d   :  { %v310_v5 = vadd.f32 %v550_v53, %v309_v4  ;;  %687 = vmatprep.mubr.msk.f32.mxu0 %vm198_vm1, %v330_v1  ;;  %v333_v8 = vmax.f32 %v315_v3, 0.0 }
 0x19e   :  { %v667_v6 = vpop.f32.mrf.mxu1  ;;  %688 = vmatmul.mubr.msk.f32.gmra.mxu0 %vm198_vm1, %v331_v2 }
 0x19f   :  { %v332_v7 = vmax.f32 %v310_v5, 0.0  ;;  %v325_v9 = vadd.f32 %v667_v6, %v550_v53 }
 0x1a0   :  { %v319_v10 = vpop.f32.mrf.mxu1 }
 0x1a1   :  { %v320_v11 = vadd.f32 %v550_v53, %v319_v10  ;;  %690 = vmatprep.mubr.msk.f32.mxu0 %vm198_vm1, %v332_v7  ;;  %v335_v13 = vmax.f32 %v325_v9, 0.0 }
 0x1a2   :  { %691 = vmatmul.mubr.msk.f32.gmra.mxu0 %vm198_vm1, %v333_v8 }
 0x1a3   :  { %v334_v12 = vmax.f32 %v320_v11, 0.0 }
 0x1a5   :  { %693 = vmatprep.mubr.msk.f32.mxu1 %vm198_vm1, %v334_v12 }
 0x1a6   :  { %694 = vmatmul.mubr.msk.f32.vlgmr.msra.gmra.mxu1 %vm198_vm1, %v335_v13 }
 0x25a   :  { %v686_v15 = vpop.f32.mrf.mxu0 }
 0x25b   :  { %v447_v16 = vadd.f32 %v686_v15, %v559_v14 }
 0x25c   :  { %v441_v17 = vpop.f32.mrf.mxu0 }
 0x25d   :  { %v569_v18 = vmul.f32 -1.442695, %v447_v16  ;;  %v442_v19 = vadd.f32 %v559_v14, %v441_v17 }
 0x25e   :  { %v689_v20 = vpop.f32.mrf.mxu0 }
 0x25f   :  { %712 = vpow2.f32 %v569_v18  ;;  %v568_v21 = vmul.f32 -1.442695, %v442_v19  ;;  %v457_v22 = vadd.f32 %v689_v20, %v559_v14 }
 0x260   :  { %v451_v23 = vpop.f32.mrf.mxu0 }
 0x261   :  { %714 = vpow2.f32 %v568_v21  ;;  %v571_v24 = vmul.f32 -1.442695, %v457_v22  ;;  %v452_v25 = vadd.f32 %v559_v14, %v451_v23 }
 0x262   :  { %v692_v26 = vpop.f32.mrf.mxu0 }
 0x263   :  { %716 = vpow2.f32 %v571_v24  ;;  %v570_v27 = vmul.f32 -1.442695, %v452_v25  ;;  %v467_v28 = vadd.f32 %v692_v26, %v559_v14 }
 0x264   :  { %v461_v29 = vpop.f32.mrf.mxu0 }
 0x265   :  { %718 = vpow2.f32 %v570_v27  ;;  %v573_v30 = vmul.f32 -1.442695, %v467_v28  ;;  %v462_v31 = vadd.f32 %v559_v14, %v461_v29 }
 0x266   :  { %v695_v32 = vpop.f32.mrf.mxu1 }
 0x267   :  { %720 = vpow2.f32 %v573_v30  ;;  %v572_v33 = vmul.f32 -1.442695, %v462_v31  ;;  %v477_v34 = vadd.f32 %v695_v32, %v559_v14 }
 0x268   :  { %v471_v35 = vpop.f32.mrf.mxu1 }
 0x269   :  { %722 = vpow2.f32 %v572_v33  ;;  %v575_v36 = vmul.f32 -1.442695, %v477_v34  ;;  %v472_v37 = vadd.f32 %v559_v14, %v471_v35 }
 0x26b   :  { %724 = vpow2.f32 %v575_v36  ;;  %v574_v38 = vmul.f32 -1.442695, %v472_v37 }
 0x26c   :  { %v713_v39 = vpop.eup %712 }
 0x26d   :  { %v505_v40 = vadd.f32 1.0, %v713_v39  ;;  %726 = vpow2.f32 %v574_v38 }
 0x26e   :  { %v715_v41 = vpop.eup %714 }
 0x26f   :  { %728 = vrcp.f32 %v505_v40  ;;  %v504_v42 = vadd.f32 1.0, %v715_v41 }
 0x270   :  { %v717_v43 = vpop.eup %716 }
 0x271   :  { %730 = vrcp.f32 %v504_v42  ;;  %v507_v44 = vadd.f32 1.0, %v717_v43 }
 0x272   :  { %v719_v45 = vpop.eup %718 }
 0x273   :  { %732 = vrcp.f32 %v507_v44  ;;  %v506_v46 = vadd.f32 1.0, %v719_v45 }
 0x274   :  { %v721_v47 = vpop.eup %720 }
 0x275   :  { %734 = vrcp.f32 %v506_v46  ;;  %v509_v48 = vadd.f32 1.0, %v721_v47 }
 0x276   :  { %v723_v49 = vpop.eup %722 }
 0x277   :  { %736 = vrcp.f32 %v509_v48  ;;  %v508_v50 = vadd.f32 1.0, %v723_v49 }
 0x278   :  { %v725_v51 = vpop.eup %724 }
 0x279   :  { %738 = vrcp.f32 %v508_v50  ;;  %v511_v52 = vadd.f32 1.0, %v725_v51 }
 0x27a   :  { %v727_v53 = vpop.eup %726 }
 0x27b   :  { %740 = vrcp.f32 %v511_v52  ;;  %v510_v54 = vadd.f32 1.0, %v727_v53 }
 0x27c   :  { %v729_v55 = vpop.eup %728 }
 0x27d   :  { %530 = vst.msk [vmem:[%s940_s7 + $0x8] sm:$0xff] %vm528_vm2, %v729_v55  ;;  %742 = vrcp.f32 %v510_v54 }
 0x27e   :  { %v731_v56 = vpop.eup %730 }
 0x27f   :  { %529 = vst.msk [vmem:[%s940_s7] sm:$0xff] %vm528_vm2, %v731_v56 }
 0x280   :  { %v733_v57 = vpop.eup %732 }
 0x281   :  { %532 = vst.msk [vmem:[%s940_s7 + $0x18] sm:$0xff] %vm528_vm2, %v733_v57 }
 0x282   :  { %v735_v58 = vpop.eup %734 }
 0x283   :  { %531 = vst.msk [vmem:[%s940_s7 + $0x10] sm:$0xff] %vm528_vm2, %v735_v58 }
 0x284   :  { %v737_v59 = vpop.eup %736 }
 0x285   :  { %534 = vst.msk [vmem:[%s940_s7 + $0x28] sm:$0xff] %vm528_vm2, %v737_v59 }
 0x286   :  { %v739_v60 = vpop.eup %738 }
 0x287   :  { %533 = vst.msk [vmem:[%s940_s7 + $0x20] sm:$0xff] %vm528_vm2, %v739_v60 }
 0x288   :  { %v741_v61 = vpop.eup %740 }
 0x289   :  { %536 = vst.msk [vmem:[%s940_s7 + $0x38] sm:$0xff] %vm528_vm2, %v741_v61 }
 0x28a   :  { %v743_v62 = vpop.eup %742 }
 0x28b   :  { %535 = vst.msk [vmem:[%s940_s7 + $0x30] sm:$0xff] %vm528_vm2, %v743_v62 }

</bundles_post_ra>
